<compile_context>
chip_gen: v6e
topology: v6e:2x2x1
jax: 0.10.0
libtpu: 0.0.40
codegen_flags: <defaults>
</compile_context>

<pallas_src>
import functools

import jax
import jax.numpy as jnp
from jax.experimental import pallas as pl
from jax.experimental.pallas import tpu as pltpu


_VMEM_LIMIT_BYTES = 48 << 20    # raised scoped-VMEM limit; safe on v5e/v6e (128 MiB
                                # physical) and v7x (64 MiB per TensorCore) w/ headroom.
_BLOCK_BUDGET_BYTES = 32 << 20  # budget for pipelined block buffers (in+out, x2 bufs).


def _hardsigmoid(y):
    # Hardsigmoid: clip((y + 3) / 6, 0, 1).  Multiply by 1/6 (<= 1 ULP difference).
    return jnp.clip((y + 3.0) * (1.0 / 6.0), 0.0, 1.0)


def _pick_batch_tile(batch, bytes_per_row, budget_bytes):
    cap = max(1, budget_bytes // max(1, bytes_per_row))
    cap = min(cap, batch)
    if batch >= 2:
        # Keep the grid at >= 2 steps so the "parallel" axis can shard across
        # both TensorCores on v7x (costs nothing on v5e/v6e).
        cap = min(cap, (batch + 1) // 2)
    return cap


def _pick_width_tile(width, bytes_per_lane, budget_bytes):
    """Largest width tile that is a multiple of 128 (or the full width)."""
    if width <= 128:
        return width
    cap = budget_bytes // max(1, bytes_per_lane)
    if cap >= width:
        return width
    return max(128, (cap // 128) * 128)


# --------------------------------------------------------------------------
# Fused single-pass kernel: whole width resident per batch tile.
# --------------------------------------------------------------------------
def _fused_kernel(x_ref, wt_ref, b_ref, o_ref, *, inv_w):
    x = x_ref[...]                                                 # (bt, C, W)
    # Global average pool over width; accumulate in f32.
    pooled = jnp.sum(x, axis=2, dtype=jnp.float32) * inv_w         # (bt, C)
    # Linear (weight pre-transposed & pre-cast to f32 in the wrapper) + bias.
    y = jnp.dot(pooled, wt_ref[...], preferred_element_type=jnp.float32)
    y = _hardsigmoid(y + b_ref[...])                               # (bt, C)
    scale = y.astype(x_ref.dtype)
    o_ref[...] = (x * scale[:, :, None]).astype(o_ref.dtype)


# --------------------------------------------------------------------------
# Two-pass fallback (huge rows): pass 1 pools over W tiles and computes the
# gate; pass 2 applies the gate tile-by-tile.
# --------------------------------------------------------------------------
def _pool_gate_kernel(x_ref, wt_ref, b_ref, y_ref, acc_ref, *, inv_w, w_total, w_tile):
    j = pl.program_id(1)

    @pl.when(j == 0)
    def _():
        acc_ref[...] = jnp.zeros_like(acc_ref)

    x = x_ref[...]                                                 # (1, C, wt)
    if w_total % w_tile != 0:
        # Final W tile is partial: mask out-of-range lanes (stale buffer data).
        valid = w_total - j * w_tile
        lane = jax.lax.broadcasted_iota(jnp.int32, x.shape, 2)
        x = jnp.where(lane < valid, x, jnp.zeros_like(x))
    acc_ref[...] += jnp.sum(x, axis=2, dtype=jnp.float32)          # (1, C)

    @pl.when(j == pl.num_programs(1) - 1)
    def _():
        pooled = acc_ref[...] * inv_w                              # (1, C)
        y = jnp.dot(pooled, wt_ref[...], preferred_element_type=jnp.float32)
        y = _hardsigmoid(y + b_ref[...])
        y_ref[...] = y[:, :, None].astype(y_ref.dtype)             # (1, C, 1)


def _apply_gate_kernel(x_ref, y_ref, o_ref):
    x = x_ref[...]                                                 # (1, C, wt)
    scale = y_ref[...].astype(x_ref.dtype)                         # (1, C, 1)
    o_ref[...] = (x * scale).astype(o_ref.dtype)


# --------------------------------------------------------------------------
# Wrapper
# --------------------------------------------------------------------------
def channel_attention(x, weight, bias, *, block_budget_bytes=_BLOCK_BUDGET_BYTES):
    """x: (B, C, W); weight: (C, C) nn.Linear weight; bias: (C,)."""
    B, C, W = x.shape
    itemsize = jnp.dtype(x.dtype).itemsize
    inv_w = 1.0 / W

    # Pre-transpose and pre-cast parameters once (no per-step casts in-kernel).
    wt_f32 = weight.T.astype(jnp.float32)            # (C, C)
    b_f32 = bias.astype(jnp.float32).reshape(1, C)   # (1, C)
    param_bytes = (C * C + C) * 4

    row_bytes = C * W * itemsize                      # one (1, C, W) row of x
    fused_ok = 4 * row_bytes <= block_budget_bytes    # in+out, double-buffered

    if fused_ok:
        # ---------------- single fused pass ----------------
        bt = _pick_batch_tile(B, 4 * row_bytes, block_budget_bytes)
        grid = (pl.cdiv(B, bt),)
        cost = pl.CostEstimate(
            flops=2 * B * C * C + 2 * B * C * W,
            transcendentals=0,
            bytes_accessed=2 * B * C * W * itemsize + param_bytes,
        )
        return pl.pallas_call(
            functools.partial(_fused_kernel, inv_w=inv_w),
            out_shape=jax.ShapeDtypeStruct((B, C, W), x.dtype),
            grid=grid,
            in_specs=[
                pl.BlockSpec((bt, C, W), lambda i: (i, 0, 0)),
                pl.BlockSpec((C, C), lambda i: (0, 0)),
                pl.BlockSpec((1, C), lambda i: (0, 0)),
            ],
            out_specs=pl.BlockSpec((bt, C, W), lambda i: (i, 0, 0)),
            compiler_params=pltpu.CompilerParams(
                dimension_semantics=("parallel",),
                vmem_limit_bytes=_VMEM_LIMIT_BYTES,
            ),
            cost_estimate=cost,
        )(x, wt_f32, b_f32)

    # ---------------- two-pass fallback (W-tiled) ----------------
    # Pass 1: pooled sum over W tiles -> gate y = hardsigmoid(pooled @ W^T + b).
    wt1 = _pick_width_tile(W, 2 * C * itemsize, block_budget_bytes)
    nw1 = pl.cdiv(W, wt1)
    y = pl.pallas_call(
        functools.partial(_pool_gate_kernel, inv_w=inv_w, w_total=W, w_tile=wt1),
        out_shape=jax.ShapeDtypeStruct((B, C, 1), jnp.float32),
        grid=(B, nw1),
        in_specs=[
            pl.BlockSpec((1, C, wt1), lambda i, j: (i, 0, j)),
            pl.BlockSpec((C, C), lambda i, j: (0, 0)),
            pl.BlockSpec((1, C), lambda i, j: (0, 0)),
        ],
        out_specs=pl.BlockSpec((1, C, 1), lambda i, j: (i, 0, 0)),
        scratch_shapes=[pltpu.VMEM((1, C), jnp.float32)],
        compiler_params=pltpu.CompilerParams(
            dimension_semantics=("parallel", "arbitrary"),
            vmem_limit_bytes=_VMEM_LIMIT_BYTES,
        ),
        cost_estimate=pl.CostEstimate(
            flops=B * C * W + 2 * B * C * C,
            transcendentals=0,
            bytes_accessed=B * C * W * itemsize + param_bytes + B * C * 4,
        ),
    )(x, wt_f32, b_f32)

    # Pass 2: out = x * y (broadcast over width), tiled over (B, W).
    wt2 = _pick_width_tile(W, 4 * C * itemsize, block_budget_bytes)
    nw2 = pl.cdiv(W, wt2)
    return pl.pallas_call(
        _apply_gate_kernel,
        out_shape=jax.ShapeDtypeStruct((B, C, W), x.dtype),
        grid=(B, nw2),
        in_specs=[
            pl.BlockSpec((1, C, wt2), lambda i, j: (i, 0, j)),
            pl.BlockSpec((1, C, 1), lambda i, j: (i, 0, 0)),
        ],
        out_specs=pl.BlockSpec((1, C, wt2), lambda i, j: (i, 0, j)),
        compiler_params=pltpu.CompilerParams(
            dimension_semantics=("parallel", "parallel"),
            vmem_limit_bytes=_VMEM_LIMIT_BYTES,
        ),
        cost_estimate=pl.CostEstimate(
            flops=B * C * W,
            transcendentals=0,
            bytes_accessed=2 * B * C * W * itemsize + B * C * 4,
        ),
    )(x, y)


def channel_attention_ref(x, weight, bias):
    pooled = jnp.mean(x, axis=2)
    y = pooled @ weight.T + bias
    y = jnp.clip((y + 3.0) / 6.0, 0.0, 1.0)
    return x * y[:, :, None]


if __name__ == "__main__":
    key = jax.random.PRNGKey(0)
    kx, kw, kb, kx2 = jax.random.split(key, 4)

    # Small shapes consistent with the module: batch=2, channels=4, width=16.
    B, C, W = 2, 4, 16
    x = jax.random.normal(kx, (B, C, W), dtype=jnp.float32)

    # 1) Parameters matching the module __init__ (weight zeroed, bias ones).
    weight0 = jnp.zeros((C, C), dtype=jnp.float32)
    bias1 = jnp.ones((C,), dtype=jnp.float32)
    out = jax.block_until_ready(channel_attention(x, weight0, bias1))
    ref = channel_attention_ref(x, weight0, bias1)
    assert jnp.allclose(out, ref, atol=1e-5, rtol=1e-5), "mismatch (init params)"

    # 2) Random parameters: exercise pool -> linear -> hardsigmoid -> scale.
    weight_r = jax.random.normal(kw, (C, C), dtype=jnp.float32)
    bias_r = jax.random.normal(kb, (C,), dtype=jnp.float32)
    out_r = jax.block_until_ready(channel_attention(x, weight_r, bias_r))
    ref_r = channel_attention_ref(x, weight_r, bias_r)
    assert jnp.allclose(out_r, ref_r, atol=1e-5, rtol=1e-5), "mismatch (random params)"

    # 3) Force the W-tiled two-pass fallback (tiny block budget) with a width
    #    that is not a multiple of 128, to exercise the masked partial W tile.
    B2, C2, W2 = 2, 8, 200
    x2 = jax.random.normal(kx2, (B2, C2, W2), dtype=jnp.float32)
    weight2 = jax.random.normal(kw, (C2, C2), dtype=jnp.float32)
    bias2 = jax.random.normal(kb, (C2,), dtype=jnp.float32)
    out2 = jax.block_until_ready(
        channel_attention(x2, weight2, bias2, block_budget_bytes=4096))
    ref2 = channel_attention_ref(x2, weight2, bias2)
    assert jnp.allclose(out2, ref2, atol=1e-5, rtol=1e-5), "mismatch (two-pass path)"

    print("KERNEL_OK")
</pallas_src>

<mosaic_0001>
module attributes {stable_mosaic.version = 11 : i64} {
  func.func @_fused_kernel(%arg0: i32, %arg1: memref<1x4x16xf32, #tpu.memory_space<vmem>>, %arg2: memref<4x4xf32, #tpu.memory_space<vmem>>, %arg3: memref<1x4xf32, #tpu.memory_space<vmem>>, %arg4: memref<1x4x16xf32, #tpu.memory_space<vmem>>) attributes {dimension_semantics = [#tpu.dimension_semantics<parallel>], iteration_bounds = array<i64: 2>, scalar_prefetch = 0 : i64, scratch_operands = 0 : i64, tpu.core_type = #tpu.core_type<tc>, window_params = [{transform_indices = @transform_0, window_bounds = array<i64: 1, 4, 16>}, {pipeline_mode = #tpu.pipeline_mode<synchronous>, transform_indices = @transform_1, window_bounds = array<i64: 4, 4>}, {pipeline_mode = #tpu.pipeline_mode<synchronous>, transform_indices = @transform_2, window_bounds = array<i64: 1, 4>}, {transform_indices = @transform_3, window_bounds = array<i64: 1, 4, 16>}]} {
    %c0 = arith.constant 0 : index
    %c0_0 = arith.constant 0 : index
    %c0_1 = arith.constant 0 : index
    %0 = vector.load %arg1[%c0, %c0_0, %c0_1] : memref<1x4x16xf32, #tpu.memory_space<vmem>>, vector<1x4x16xf32>
    %cst = arith.constant dense<0.000000e+00> : vector<1x4xf32>
    %1 = vector.multi_reduction <add>, %0, %cst [2] : vector<1x4x16xf32> to vector<1x4xf32>
    %cst_2 = arith.constant 6.250000e-02 : f32
    %2 = vector.broadcast %cst_2 : f32 to vector<1x4xf32>
    %3 = arith.mulf %1, %2 : vector<1x4xf32>
    %c0_3 = arith.constant 0 : index
    %c0_4 = arith.constant 0 : index
    %4 = vector.load %arg2[%c0_3, %c0_4] : memref<4x4xf32, #tpu.memory_space<vmem>>, vector<4x4xf32>
    %cst_5 = arith.constant dense<0.000000e+00> : vector<1x4xf32>
    %5 = tpu.matmul %3, %4, %cst_5 {dimension_numbers = #tpu.dot_dimension_numbers<[1], [0], [0], [1], [0, 0, 1, 1], [], []>} : vector<1x4xf32>, vector<4x4xf32>, vector<1x4xf32> -> vector<1x4xf32>
    %c0_6 = arith.constant 0 : index
    %c0_7 = arith.constant 0 : index
    %6 = vector.load %arg3[%c0_6, %c0_7] : memref<1x4xf32, #tpu.memory_space<vmem>>, vector<1x4xf32>
    %7 = arith.addf %5, %6 : vector<1x4xf32>
    %cst_8 = arith.constant 3.000000e+00 : f32
    %8 = vector.broadcast %cst_8 : f32 to vector<1x4xf32>
    %9 = arith.addf %7, %8 : vector<1x4xf32>
    %cst_9 = arith.constant 0.166666672 : f32
    %10 = vector.broadcast %cst_9 : f32 to vector<1x4xf32>
    %11 = arith.mulf %9, %10 : vector<1x4xf32>
    %cst_10 = arith.constant 0.000000e+00 : f32
    %cst_11 = arith.constant 1.000000e+00 : f32
    %12 = vector.broadcast %cst_10 : f32 to vector<1x4xf32>
    %13 = arith.maximumf %12, %11 : vector<1x4xf32>
    %14 = vector.broadcast %cst_11 : f32 to vector<1x4xf32>
    %15 = arith.minimumf %14, %13 : vector<1x4xf32>
    %16 = vector.shape_cast %15 : vector<1x4xf32> to vector<1x4x1xf32>
    %17 = vector.broadcast %16 : vector<1x4x1xf32> to vector<1x4x16xf32>
    %18 = arith.mulf %0, %17 : vector<1x4x16xf32>
    %c0_12 = arith.constant 0 : index
    %c0_13 = arith.constant 0 : index
    %c0_14 = arith.constant 0 : index
    %19 = vector.load %arg4[%c0_12, %c0_13, %c0_14] : memref<1x4x16xf32, #tpu.memory_space<vmem>>, vector<1x4x16xf32>
    tpu.vector_store %arg4[%c0_12, %c0_13, %c0_14], %18 {strides = array<i32>} : memref<1x4x16xf32, #tpu.memory_space<vmem>>, vector<1x4x16xf32>,
    return
  }
  func.func @transform_0(%arg0: i32) -> (i32, i32, i32) {
    %c0_i32 = arith.constant 0 : i32
    %c0_i32_0 = arith.constant 0 : i32
    %c0_i32_1 = arith.constant 0 : i32
    return %arg0, %c0_i32, %c0_i32_0 : i32, i32, i32
  }
  func.func @transform_1(%arg0: i32) -> (i32, i32) {
    %c0_i32 = arith.constant 0 : i32
    %c0_i32_0 = arith.constant 0 : i32
    %c0_i32_1 = arith.constant 0 : i32
    return %c0_i32, %c0_i32_0 : i32, i32
  }
  func.func @transform_2(%arg0: i32) -> (i32, i32) {
    %c0_i32 = arith.constant 0 : i32
    %c0_i32_0 = arith.constant 0 : i32
    %c0_i32_1 = arith.constant 0 : i32
    return %c0_i32, %c0_i32_0 : i32, i32
  }
  func.func @transform_3(%arg0: i32) -> (i32, i32, i32) {
    %c0_i32 = arith.constant 0 : i32
    %c0_i32_0 = arith.constant 0 : i32
    %c0_i32_1 = arith.constant 0 : i32
    return %arg0, %c0_i32, %c0_i32_0 : i32, i32, i32
  }
}

</mosaic_0001>

<bundles_post_ra>
// kernel: tpu_custom_call.1
= control target key start
LH: loop header
LB: loop body
LE: loop exit
PB: predicated region body
PF: predicated region fallthrough
CT: control target
= control target key end

     0   :  { %8 = vsyncpa [#allocation3], 0  ;;  %s804_s0 = inlined_call_operand.hbm [shape: f32[2,4,16], index: 0, kind: input, shape index: {}]   ;;  %s805_s1 = inlined_call_operand.hbm [shape: f32[4,4], index: 1, kind: input, shape index: {}]   ;;  %s806_s2 = inlined_call_operand.vmem [shape: f32[1,4], index: 2, kind: input, shape index: {}]   ;;  %s807_s3 = inlined_call_operand.hbm [shape: f32[2,4,16], index: 3, kind: output, shape index: {}]  }
   0x1   :  { %10 = vsyncpa [#allocation3 + $0x1], 0 }
   0x2   :  { %11 = vsyncpa [#allocation6], 0 }
   0x3   :  { %12 = vsyncpa [#allocation4], 0 }
   0x4   :  { %14 = vsyncpa [#allocation4 + $0x1], 0  ;;  %s629_s12 = smov 0   ;;  %s631_s13 = smov 0  }
   0x5   :  { %s633_s14 = smov 0   ;;  %s635_s15 = smov 0  }
   0x6 LB: > { %s650_s16 = sadd.s32 4294967295, %s602_s15   ;;  %s398_s17 = sadd.s32 4294967294, %s602_s15   ;;  %s602_s15 = sphi %s635_s15, %s830_s15   ;;  %s598_s14 = sphi %s633_s14, %s829_s14   ;;  %s594_s13 = sphi %s631_s13, %s828_s13   ;;  %s590_s12 = sphi %s629_s12, %s827_s12  }
   0x7   : > { %p40_p0 = scmp.ne.s32.totalorder %s594_s13, %s590_s12  ;;  %p808_p1 = scmp.eq.s32.totalorder %s650_s16, 0 }
   0x8   : > { %p112_p3 = scmp.eq.s32.totalorder %s398_s17, 1  ;;  %p399_p5 = scmp.ge.s32.totalorder %s602_s15, 1 }
   0x9   : > { %p659_p4 = por %p808_p1, %p40_p0  ;;  %p119_p7 = scmp.lt.s32.totalorder %s602_s15, 3 }
   0xa   : > { %p664_p6 = por %p112_p3, %p40_p0  ;;  %s604_s21 = smov [#allocation5]  }
   0xb   : > { %s812_s18 = scalar_select %p659_p4, 1, 0 }
   0xc   : > { %s813_s19 = scalar_select %p664_p6, 1, 0 }
   0xd   : > { %p669_p8 = pnand %p399_p5, %p119_p7  ;;  %s132_s22 = sshll.u32 %s604_s21, 4  ;;  %s133_s22 = int_to_ptr.vmem [resolvable:$true] %s132_s22 }
   0xe   : > { %s677_s23 = sadd.s32 1, %s602_s15   ;;  %s27_s27 = sadd.s32 1, %s598_s14 }
   0xf   : > { %s814_s20 = scalar_select %p669_p8, 1, 0 }
  0x10   : > { %p429_p10 = pneg %p669_p8  ;;  %s24_s25 = ssub.s32 %s602_s15, %s677_s23 }
  0x11   : > { %p687_p12 = scmp.eq.s32.totalorder %s24_s25, 0  ;;  %p34_p13 = scmp.ne.s32.totalorder %s598_s14, %s594_s13 }
  0x12   : > { %p681_p11 = pnand %p429_p10, %p808_p1  ;;  %s491_s28 = scalar_lea.vmem %s133_s22, 64 }
  0x13   : > { %p492_p3 = scmp.ne.s32.totalorder %s133_s22, %s491_s28  ;;  %p499_p9 = scmp.lt.s32.totalorder %s133_s22, %s133_s22 }
  0x14   : > { %p482_p0 = pneg %p681_p11  ;;  %p500_p2 = scmp.lt.s32.totalorder %s491_s28, %s491_s28 }
  0x16   : > { %p494_p5 = pnand %p492_p3, %p482_p0  ;;  %p501_p10 = por %p500_p2, %p499_p9 }
  0x18   : > { %p495_p7 = pneg %p494_p5 }
  0x1a   : > { %p502_p1 = pnand %p501_p10, %p495_p7 }
  0x1c   : > { %505 = shalt.err (!%p502_p1)
}
  0x1d   : > { %432 = dma.hbm_to_vmem [thread:$0]  (!%p681_p11), %s805_s1, 64, %s133_s22, [#allocation6]  }
  0x1e   : > { %s704_s4 = scalar_select %p687_p12, %s598_s14, %s27_s27  }
  0x1f   : > { %p35_p1 = scmp.eq.s32.totalorder %s602_s15, 0  ;;  %p817_p2 = scmp.eq.s32.totalorder %s650_s16, 1 }
  0x20   : > { %p442_p0 = scmp.lt.s32.totalorder %s602_s15, 2  ;;  %s146_s6 = sand.u32 1, %s598_s14  }
  0x21   : > { %p712_p9 = por %p817_p2, %p34_p13  ;;  %p36_p3 = por %p35_p1, %p34_p13 }
  0x22   : > { %s402_s7 = sshll.u32 %s146_s6, 2  ;;  %s403_s8 = sshll.u32 %s602_s15, 6 }
  0x23   : > { %s818_s5 = scalar_select %p712_p9, 1, 0 }
  0x24   : > { %s725_s11 = scalar_lea.hbm %s804_s0, %s403_s8  ;;  %s150_s17 = scalar_lea.vmem [#allocation2], %s402_s7 }
  0x25   : > { %s157_s21 = sshll.u32 %s150_s17, 4  ;;  %p727_p11 = pnand %p442_p0, %p36_p3  ;;  %s158_s21 = int_to_ptr.vmem [resolvable:$true] %s157_s21 }
  0x26   : > { %s147_s24 = scalar_lea.sflag [#allocation3], %s146_s6  ;;  %s506_s25 = scalar_lea.hbm %s725_s11, 64 }
  0x27   : > { %p507_p12 = scmp.ne.s32.totalorder %s725_s11, %s506_s25  ;;  %p508_p13 = pneg %p727_p11 }
  0x28   : > { %s511_s28 = scalar_lea.hbm %s804_s0, 128  ;;  %p512_p10 = scmp.lt.s32.totalorder %s725_s11, %s804_s0 }
  0x29   : > { %p509_p5 = pnand %p508_p13, %p507_p12  ;;  %p513_p1 = scmp.lt.s32.totalorder %s511_s28, %s506_s25 }
  0x2b   : > { %p510_p7 = pneg %p509_p5  ;;  %p514_p2 = por %p513_p1, %p512_p10 }
  0x2d   : > { %p515_p0 = pnand %p514_p2, %p510_p7 }
  0x2f   : > { %518 = shalt.err (!%p515_p0)
}
  0x30   : > { %s519_s7 = scalar_lea.vmem %s158_s21, 64  ;;  %s605_s6 = smov [#allocation2]  }
  0x31   : > { %p520_p3 = scmp.ne.s32.totalorder %s158_s21, %s519_s7  ;;  %s524_s8 = sshll.u32 %s605_s6, 4  ;;  %s525_s8 = int_to_ptr.vmem [resolvable:$false] %s524_s8 }
  0x32   : > { %s526_s9 = scalar_lea.vmem %s525_s8, 128  ;;  %p527_p12 = scmp.lt.s32.totalorder %s158_s21, %s525_s8 }
  0x33   : > { %p522_p6 = pnand %p520_p3, %p508_p13  ;;  %p528_p5 = scmp.lt.s32.totalorder %s526_s9, %s519_s7 }
  0x35   : > { %p523_p9 = pneg %p522_p6  ;;  %p529_p4 = por %p528_p5, %p527_p12 }
  0x37   : > { %p530_p8 = pnand %p529_p4, %p523_p9 }
  0x39   : > { %533 = shalt.err (!%p530_p8)
}
  0x3a   : > { %436 = dma.hbm_to_vmem [thread:$0]  (!%p727_p11), %s725_s11, 64, %s158_s21, %s147_s24  }
  0x3b   : > { %p820_p7 = scmp.ne.s32.totalorder %s814_s20, 0 }
  0x3c   : > { %s748_s10 = sand.u32 (!%p820_p7), 1, %s594_s13   ;;  %p821_p4 = scmp.ne.s32.totalorder (!%p820_p7), %s812_s18, 0 }
  0x3d   : > { %166 = sbr.rel (%p820_p7) target bundleno = 549 (0x225), region = 32  ;;  %s405_s17 = sshll.u32 (!%p820_p7), %s748_s10, 2 }
  0x3e   : > { %s169_s25 = scalar_lea.sflag (!%p820_p7), [#allocation3], %s748_s10  ;;  %s172_s26 = scalar_lea.vmem (!%p820_p7), [#allocation2], %s405_s17 }
  0x42   : > { %577 = dma.done.wait (%p821_p4), %s169_s25, 64  }
  0x43   : > { %579 = vsyncadd (%p821_p4), %s169_s25, 4294967232  ;;  %p822_p6 = scmp.eq.s32.totalorder %s650_s16, 0 }
  0x45   : > { %581 = dma.done.wait (%p822_p6), [#allocation6], 64   ;;  %p823_p8 = pmov %p822_p6 }
  0x46   : > { %vm200_vm0 = vcmask 125952   ;;  %v199_v0 = vld [vmem:[%s172_s26] sm:$0xf]  ;;  %v606_v2 = vmov 0.0   ;;  %v205_v3 = vld [vmem:[#allocation5] sm:$0xf]  ;;  %v208_v4 = vlaneseq }
  0x47   : > { %583 = vsyncadd (%p823_p8), [#allocation6], 4294967232  ;;  %v201_v1 = vsel %vm200_vm0, %v199_v0, 0.0  ;;  %416 = vmatprep.subr.mxu0 %v606_v2  ;;  %vm217_vm1 = vcmask 1043456   ;;  %vm607_vm2 = vmmov 0   ;;  %vm214_vm3 = vcmask 31744  }
  0x48   : > { %202 = vadd.xlane.f32.xlu0 %v201_v1  ;;  %417 = vmatpush3.msk.msra.mxu0 %vm217_vm1, %v205_v3  ;;  %v209_v5 = vand.u32 127, %v208_v4  ;;  %v211_v6 = vshrl.u32 %v208_v4, 7  ;;  %v206_v11 = vld [vmem:[%s806_s2] sm:$0x1]  ;;  %s411_s11 = sshll.u32 %s650_s16, 6  ;;  %s198_s21 = scalar_lea.vmem [#allocation7], %s405_s17 }
  0x49   : > { %418 = vmatprep.mubr.msk.f32.mxu0 %vm607_vm2, %v606_v2  ;;  %s318_s22 = sshll.u32 %s198_s21, 4  ;;  %s316_s28 = scalar_lea.hbm %s807_s3, %s411_s11  ;;  %s319_s22 = int_to_ptr.vmem [resolvable:$true] %s318_s22 }
  0x4a   : > { %v212_v7 = vsub.s32 %v209_v5, %v211_v6  ;;  %v297_v18 = vsub.s32 0, %v211_v6  ;;  %s305_s29 = scalar_lea.sflag [#allocation4], %s748_s10  ;;  %s534_s30 = scalar_lea.vmem %s319_s22, 64 }
  0x4b   : > { %p535_p9 = scmp.ne.s32.totalorder %s319_s22, %s534_s30  ;;  %p824_p11 = scmp.ne.s32.totalorder %s818_s5, 0 }
  0x4c   : > { %s608_s7 = smov [#allocation7]  }
  0x4d   : > { %p536_p13 = pnand %p535_p9, %p824_p11  ;;  %s538_s16 = sshll.u32 %s608_s7, 4  ;;  %s539_s16 = int_to_ptr.vmem [resolvable:$false] %s538_s16 }
  0x4e   : > { %s540_s6 = scalar_lea.vmem %s539_s16, 128  ;;  %p541_p1 = scmp.lt.s32.totalorder %s319_s22, %s539_s16 }
  0x4f   : > { %p537_p10 = pneg %p536_p13  ;;  %p542_p2 = scmp.lt.s32.totalorder %s540_s6, %s534_s30 }
  0x51   : > { %p543_p0 = por %p542_p2, %p541_p1 }
  0x53   : > { %p544_p3 = pnand %p543_p0, %p537_p10 }
  0xd1   : > { %v203_v8 = vpop.xlane.xlu0 %202 }
  0xd2   : > { %v204_v9 = vmul.f32 0.0625, %v203_v8 }
  0xd4   : > { %v213_v10 = vrot.slane %v204_v9, %v212_v7 }
  0xd6   : > { %419 = vmatmul.mubr.msk.f32.vlgmr.msra.gmra.mxu0 %vm214_vm3, %v213_v10 }
 0x196   : > { %v287_v12 = vpop.f32.mrf.mxu0 }
 0x197   : > { %v288_v13 = vadd.f32 %v287_v12, %v206_v11 }
 0x198   : > { %v420_v14 = vpop.f32.mrf.mxu0 }
 0x199   : > { %v291_v15 = vadd.f32 3.0, %v288_v13 }
 0x19b   : > { %v292_v16 = vmul.f32 0.16666667, %v291_v15 }
 0x19d   : > { %v293_v17 = vmax.f32 %v292_v16, 0.0 }
 0x19f   : > { %v294_v19 = vmin.f32 %v293_v17, 1.0 }
 0x1a1   : > { %v298_v20 = vrot.slane %v294_v19, %v297_v18 }
 0x1a3   : > { %300 = vbcast.lane.b32.xlu0 %v298_v20, 256 }
 0x215   : > { %v301_v21 = vpop.permute.xlu0 %300 }
 0x216   : > { %v302_v22 = vmul.f32 %v301_v21, %v199_v0 }
 0x218   : > { %303 = vst.msk [vmem:[%s198_s21] sm:$0xf] %vm200_vm0, %v302_v22 }
 0x219   : > { %547 = shalt.err (!%p544_p3)
}
 0x21a   : > { %s548_s8 = scalar_lea.hbm %s316_s28, 64  ;;  %s552_s17 = scalar_lea.hbm %s807_s3, 128 }
 0x21b   : > { %p549_p12 = scmp.ne.s32.totalorder %s316_s28, %s548_s8  ;;  %p553_p4 = scmp.lt.s32.totalorder %s316_s28, %s807_s3 }
 0x21c   : > { %p554_p6 = scmp.lt.s32.totalorder %s552_s17, %s548_s8 }
 0x21d   : > { %p550_p5 = pnand %p549_p12, %p824_p11 }
 0x21e   : > { %p555_p8 = por %p554_p6, %p553_p4 }
 0x21f   : > { %p551_p7 = pneg %p550_p5 }
 0x221   : > { %p556_p9 = pnand %p555_p8, %p551_p7 }
 0x223   : > { %559 = shalt.err (!%p556_p9)
}
 0x224   : > { %427 = dma.vmem_to_hbm [thread:$0]  (%p824_p11), %s319_s22, 64, %s316_s28, %s305_s29  }
 0x225 PF: > { %s330_s18 = sand.u32 1, %s590_s12   ;;  %p825_p13 = scmp.ne.s32.totalorder %s813_s19, 0 }
 0x226   : > { %p826_p10 = scmp.ge.s32.totalorder %s602_s15, 2  ;;  %s331_s20 = scalar_lea.sflag [#allocation4], %s330_s18 }
 0x228   : > { %p438_p1 = pnand %p826_p10, %p825_p13 }
 0x22a   : > { %p439_p2 = pneg %p438_p1 }
 0x22c   : > { %585 = dma.done.wait (%p439_p2), %s331_s20, 64  }
 0x22d   : > { %587 = vsyncadd (%p439_p2), %s331_s20, 4294967232  ;;  %p17_p0 = scmp.ge.s32.totalorder %s677_s23, 4   ;;  %s827_s12 = smov %s594_s13 }
 0x22e   : > { %s828_s13 = smov %s598_s14  ;;  %s829_s14 = smov %s704_s4 }
 0x22f   : > { %s830_s15 = smov %s677_s23  ;;  %19 = sbr.rel (!%p17_p0) target bundleno = 6 (0x6), region = 81 }
 0x234   :  { %336 = vsyncpa [#allocation3], 1 }
 0x235   :  { %338 = vsyncpa [#allocation3 + $0x1], 1 }
 0x236   :  { %339 = vsyncpa [#allocation6], 1 }
 0x237   :  { %340 = vsyncpa [#allocation4], 1 }
 0x238   :  { %342 = vsyncpa [#allocation4 + $0x1], 1 }

</bundles_post_ra>
